<compile_context>
chip_gen: v6e
topology: v6e:2x2x1
jax: 0.10.0
libtpu: 0.0.40
codegen_flags: <defaults>
</compile_context>

<pallas_src>
import jax
import jax.numpy as jnp
from jax import lax
from jax.experimental import pallas as pl
from jax.experimental.pallas import tpu as pltpu

N, C_IN, H, W = 2, 16, 8, 8          # x: (2,16,8,8) -> in_dim = 1024
C_OUT, K = 8, 3                      # conv: 16 -> 8, 3x3, padding=1
HW = H * W                           # 64
NHW = N * HW                         # 128 lane positions, ordered (n, h, w)
HID = C_OUT * HW                     # 512 == in_dim // 2
NCLS = 3
KK_CIN = K * K * C_IN                # 144 = im2col contraction depth

# The in-kernel lane decode uses shift/and; guard the power-of-two assumption.
assert H & (H - 1) == 0 and W & (W - 1) == 0, "lane decode assumes pow2 H, W"


# ---------------- fused Pallas kernel (whole forward pass) ----------------

def fused_classifier_kernel(x_ref, wc_ref, bc_ref, wl_ref, bl_ref, o_ref):
    # x_ref : (N, C_IN, HW)        raw input, (h,w) flattened (contiguous)
    # wc_ref: (C_OUT, K*K*C_IN)    conv weight, columns ordered (kh, kw, ci)
    # bc_ref: (C_OUT, 1)
    # wl_ref: (HID, NCLS)          linear weight, rows in PyTorch (c,h,w) order
    # bl_ref: (1, NCLS)
    # o_ref : (N, NCLS)            softmax probabilities

    # (C_IN, NHW): channels on sublanes, (n, h, w) lane-dense on 128 lanes.
    xe = jnp.concatenate([x_ref[n] for n in range(N)], axis=1)      # (16, 128)

    # Decode lane position -> (h, w) once; build the four edge predicates.
    r = lax.broadcasted_iota(jnp.int32, (1, NHW), 1)
    h_idx = jnp.bitwise_and(jnp.right_shift(r, 3), H - 1)           # (r // W) % H
    w_idx = jnp.bitwise_and(r, W - 1)                               # r % W
    h_m1 = h_idx >= 1
    h_p1 = h_idx <= H - 2
    w_m1 = w_idx >= 1
    w_p1 = w_idx <= W - 2

    def tap_mask(dh, dw):
        m = None
        for pred, active in ((h_m1, dh < 0), (h_p1, dh > 0),
                             (w_m1, dw < 0), (w_p1, dw > 0)):
            if active:
                m = pred if m is None else (m & pred)
        return m                                                    # None == all valid

    # Conv2d(pad=1) as ONE im2col matmul with K = 3*3*16 = 144.
    # Each tap block is a static lane roll of xe; rows falling outside the
    # image are zeroed with a (1,128) lane mask.  Valid shifts never cross a
    # sample boundary, so masking also prevents cross-sample bleed.
    blocks = []
    for kh in range(K):
        for kw in range(K):
            dh, dw = kh - 1, kw - 1
            s = dh * W + dw                                         # flat lane shift
            mask = tap_mask(dh, dw)
            if s == 0:
                blocks.append(xe)
                continue
            shifted = jnp.roll(xe, -s, axis=1)     # static: 2 lane slices + concat
            blocks.append(jnp.where(mask, shifted, 0.0))
    col = jnp.concatenate(blocks, axis=0)                           # (144, 128)

    acc = jnp.dot(wc_ref[...], col,
                  preferred_element_type=jnp.float32)               # (8, 128)
    hmat = jnp.maximum(acc + bc_ref[...], 0.0)                      # ReLU, lane-dense

    # PyTorch Reshape(-1, 512): row n = flatten of (C_OUT, H, W) in (c,h,w)
    # order.  Spelled with static slices + concats (no in-kernel reshape).
    rows = []
    for n in range(N):
        hn = hmat[:, n * HW:(n + 1) * HW]                           # (8, 64)
        rows.append(jnp.concatenate(
            [hn[c:c + 1, :] for c in range(C_OUT)], axis=1))        # (1, 512)
    z = jnp.concatenate(rows, axis=0)                               # (2, 512)

    # Linear(512 -> 3) as a single MXU matmul, then softmax over classes.
    logits = jnp.dot(z, wl_ref[...],
                     preferred_element_type=jnp.float32) + bl_ref[...]   # (2, 3)
    m = jnp.max(logits, axis=-1, keepdims=True)
    e = jnp.exp(logits - m)
    o_ref[...] = (e / jnp.sum(e, axis=-1, keepdims=True)).astype(o_ref.dtype)


# ---------------- parameter prep (hoisted, runs once) ----------------

def prepare_params(wconv, bconv, wlin, blin):
    # Conv weight: wc[co, (kh*K + kw)*C_IN + ci] = wconv[co, ci, kh, kw]
    wc = jnp.transpose(wconv, (0, 2, 3, 1)).reshape(C_OUT, KK_CIN)
    bc = bconv.reshape(C_OUT, 1)
    # Kernel z columns are already in PyTorch (c, h, w) order -> just transpose.
    wl = jnp.transpose(wlin)                                        # (512, 3)
    bl = blin.reshape(1, NCLS)
    return wc, bc, wl, bl


# ---------------- forward wrapper (zero real per-call glue) ----------------

def classifier_forward(x, params):
    wc, bc, wl, bl = params
    x3 = x.reshape(N, C_IN, HW)      # contiguous reshape -> bitcast, no copy
    vmem = pl.BlockSpec(memory_space=pltpu.MemorySpace.VMEM)
    return pl.pallas_call(
        fused_classifier_kernel,
        out_shape=jax.ShapeDtypeStruct((N, NCLS), jnp.float32),
        in_specs=[vmem] * 5,
        out_specs=vmem,
    )(x3, wc, bc, wl, bl)


# ---------------- pure-JAX reference ----------------

def reference_forward(x, wconv, bconv, wlin, blin):
    conv = lax.conv_general_dilated(
        x, wconv, window_strides=(1, 1), padding="SAME",
        dimension_numbers=("NCHW", "OIHW", "NCHW"))
    conv = conv + bconv.reshape(1, C_OUT, 1, 1)
    h = jnp.maximum(conv, 0.0)
    z = h.reshape(-1, HID)                  # PyTorch Reshape(-1, in_dim/2)
    logits = z @ wlin.T + blin
    return jax.nn.softmax(logits, axis=1)


if __name__ == "__main__":
    key = jax.random.PRNGKey(0)
    kx, kw1, kb1, kw2, kb2 = jax.random.split(key, 5)

    x = jax.random.normal(kx, (N, C_IN, H, W), jnp.float32)
    wconv = 0.10 * jax.random.normal(kw1, (C_OUT, C_IN, K, K), jnp.float32)
    bconv = 0.10 * jax.random.normal(kb1, (C_OUT,), jnp.float32)
    wlin = 0.05 * jax.random.normal(kw2, (NCLS, HID), jnp.float32)
    blin = 0.05 * jax.random.normal(kb2, (NCLS,), jnp.float32)

    params = prepare_params(wconv, bconv, wlin, blin)   # once, at load time
    fwd = jax.jit(classifier_forward)
    out = jax.block_until_ready(fwd(x, params))

    ref = reference_forward(x, wconv, bconv, wlin, blin)
    assert out.shape == (N, NCLS)
    assert jnp.allclose(out, ref, atol=1e-5, rtol=1e-5), "mismatch vs reference"

    print("KERNEL_OK")
</pallas_src>

<mosaic_0001>
module attributes {stable_mosaic.version = 11 : i64} {
  func.func @fused_classifier_kernel(%arg0: memref<2x16x64xf32, #tpu.memory_space<vmem>>, %arg1: memref<8x144xf32, #tpu.memory_space<vmem>>, %arg2: memref<8x1xf32, #tpu.memory_space<vmem>>, %arg3: memref<512x3xf32, #tpu.memory_space<vmem>>, %arg4: memref<1x3xf32, #tpu.memory_space<vmem>>, %arg5: memref<2x3xf32, #tpu.memory_space<vmem>>) attributes {dimension_semantics = [], scalar_prefetch = 0 : i64, scratch_operands = 0 : i64, tpu.core_type = #tpu.core_type<tc>} {
    %c0 = arith.constant 0 : index
    %c0_0 = arith.constant 0 : index
    %c0_1 = arith.constant 0 : index
    %0 = vector.load %arg0[%c0, %c0_0, %c0_1] : memref<2x16x64xf32, #tpu.memory_space<vmem>>, vector<1x16x64xf32>
    %1 = vector.shape_cast %0 : vector<1x16x64xf32> to vector<16x64xf32>
    %c1 = arith.constant 1 : index
    %c0_2 = arith.constant 0 : index
    %c0_3 = arith.constant 0 : index
    %2 = vector.load %arg0[%c1, %c0_2, %c0_3] : memref<2x16x64xf32, #tpu.memory_space<vmem>>, vector<1x16x64xf32>
    %3 = vector.shape_cast %2 : vector<1x16x64xf32> to vector<16x64xf32>
    %4 = tpu.concatenate %1, %3 in 1 : vector<16x64xf32>, vector<16x64xf32> -> vector<16x128xf32>
    %5 = tpu.iota {dimensions = array<i32: 1>} : vector<1x128xi32>
    %c3_i32 = arith.constant 3 : i32
    %6 = vector.broadcast %c3_i32 : i32 to vector<1x128xi32>
    %7 = arith.shrsi %5, %6 : vector<1x128xi32>
    %c7_i32 = arith.constant 7 : i32
    %8 = vector.broadcast %c7_i32 : i32 to vector<1x128xi32>
    %9 = arith.andi %7, %8 : vector<1x128xi32>
    %c7_i32_4 = arith.constant 7 : i32
    %10 = vector.broadcast %c7_i32_4 : i32 to vector<1x128xi32>
    %11 = arith.andi %5, %10 : vector<1x128xi32>
    %c1_i32 = arith.constant 1 : i32
    %12 = vector.broadcast %c1_i32 : i32 to vector<1x128xi32>
    %13 = arith.cmpi sge, %9, %12 : vector<1x128xi32>
    %c6_i32 = arith.constant 6 : i32
    %14 = vector.broadcast %c6_i32 : i32 to vector<1x128xi32>
    %15 = arith.cmpi sle, %9, %14 : vector<1x128xi32>
    %c1_i32_5 = arith.constant 1 : i32
    %16 = vector.broadcast %c1_i32_5 : i32 to vector<1x128xi32>
    %17 = arith.cmpi sge, %11, %16 : vector<1x128xi32>
    %c6_i32_6 = arith.constant 6 : i32
    %18 = vector.broadcast %c6_i32_6 : i32 to vector<1x128xi32>
    %19 = arith.cmpi sle, %11, %18 : vector<1x128xi32>
    %20 = arith.andi %13, %17 : vector<1x128xi1>
    %21 = vector.extract_strided_slice %4 {offsets = [0, 119], sizes = [16, 9], strides = [1, 1]} : vector<16x128xf32> to vector<16x9xf32>
    %22 = vector.extract_strided_slice %4 {offsets = [0, 0], sizes = [16, 119], strides = [1, 1]} : vector<16x128xf32> to vector<16x119xf32>
    %23 = tpu.concatenate %21, %22 in 1 : vector<16x9xf32>, vector<16x119xf32> -> vector<16x128xf32>
    %cst = arith.constant 0.000000e+00 : f32
    %24 = vector.shape_cast %20 : vector<1x128xi1> to vector<1x128xi1>
    %25 = vector.broadcast %24 : vector<1x128xi1> to vector<16x128xi1>
    %26 = vector.broadcast %cst : f32 to vector<16x128xf32>
    %27 = arith.select %25, %23, %26 : vector<16x128xi1>, vector<16x128xf32>
    %28 = vector.extract_strided_slice %4 {offsets = [0, 120], sizes = [16, 8], strides = [1, 1]} : vector<16x128xf32> to vector<16x8xf32>
    %29 = vector.extract_strided_slice %4 {offsets = [0, 0], sizes = [16, 120], strides = [1, 1]} : vector<16x128xf32> to vector<16x120xf32>
    %30 = tpu.concatenate %28, %29 in 1 : vector<16x8xf32>, vector<16x120xf32> -> vector<16x128xf32>
    %cst_7 = arith.constant 0.000000e+00 : f32
    %31 = vector.shape_cast %13 : vector<1x128xi1> to vector<1x128xi1>
    %32 = vector.broadcast %31 : vector<1x128xi1> to vector<16x128xi1>
    %33 = vector.broadcast %cst_7 : f32 to vector<16x128xf32>
    %34 = arith.select %32, %30, %33 : vector<16x128xi1>, vector<16x128xf32>
    %35 = arith.andi %13, %19 : vector<1x128xi1>
    %36 = vector.extract_strided_slice %4 {offsets = [0, 121], sizes = [16, 7], strides = [1, 1]} : vector<16x128xf32> to vector<16x7xf32>
    %37 = vector.extract_strided_slice %4 {offsets = [0, 0], sizes = [16, 121], strides = [1, 1]} : vector<16x128xf32> to vector<16x121xf32>
    %38 = tpu.concatenate %36, %37 in 1 : vector<16x7xf32>, vector<16x121xf32> -> vector<16x128xf32>
    %cst_8 = arith.constant 0.000000e+00 : f32
    %39 = vector.shape_cast %35 : vector<1x128xi1> to vector<1x128xi1>
    %40 = vector.broadcast %39 : vector<1x128xi1> to vector<16x128xi1>
    %41 = vector.broadcast %cst_8 : f32 to vector<16x128xf32>
    %42 = arith.select %40, %38, %41 : vector<16x128xi1>, vector<16x128xf32>
    %43 = vector.extract_strided_slice %4 {offsets = [0, 127], sizes = [16, 1], strides = [1, 1]} : vector<16x128xf32> to vector<16x1xf32>
    %44 = vector.extract_strided_slice %4 {offsets = [0, 0], sizes = [16, 127], strides = [1, 1]} : vector<16x128xf32> to vector<16x127xf32>
    %45 = tpu.concatenate %43, %44 in 1 : vector<16x1xf32>, vector<16x127xf32> -> vector<16x128xf32>
    %cst_9 = arith.constant 0.000000e+00 : f32
    %46 = vector.shape_cast %17 : vector<1x128xi1> to vector<1x128xi1>
    %47 = vector.broadcast %46 : vector<1x128xi1> to vector<16x128xi1>
    %48 = vector.broadcast %cst_9 : f32 to vector<16x128xf32>
    %49 = arith.select %47, %45, %48 : vector<16x128xi1>, vector<16x128xf32>
    %50 = vector.extract_strided_slice %4 {offsets = [0, 1], sizes = [16, 127], strides = [1, 1]} : vector<16x128xf32> to vector<16x127xf32>
    %51 = vector.extract_strided_slice %4 {offsets = [0, 0], sizes = [16, 1], strides = [1, 1]} : vector<16x128xf32> to vector<16x1xf32>
    %52 = tpu.concatenate %50, %51 in 1 : vector<16x127xf32>, vector<16x1xf32> -> vector<16x128xf32>
    %cst_10 = arith.constant 0.000000e+00 : f32
    %53 = vector.shape_cast %19 : vector<1x128xi1> to vector<1x128xi1>
    %54 = vector.broadcast %53 : vector<1x128xi1> to vector<16x128xi1>
    %55 = vector.broadcast %cst_10 : f32 to vector<16x128xf32>
    %56 = arith.select %54, %52, %55 : vector<16x128xi1>, vector<16x128xf32>
    %57 = arith.andi %15, %17 : vector<1x128xi1>
    %58 = vector.extract_strided_slice %4 {offsets = [0, 7], sizes = [16, 121], strides = [1, 1]} : vector<16x128xf32> to vector<16x121xf32>
    %59 = vector.extract_strided_slice %4 {offsets = [0, 0], sizes = [16, 7], strides = [1, 1]} : vector<16x128xf32> to vector<16x7xf32>
    %60 = tpu.concatenate %58, %59 in 1 : vector<16x121xf32>, vector<16x7xf32> -> vector<16x128xf32>
    %cst_11 = arith.constant 0.000000e+00 : f32
    %61 = vector.shape_cast %57 : vector<1x128xi1> to vector<1x128xi1>
    %62 = vector.broadcast %61 : vector<1x128xi1> to vector<16x128xi1>
    %63 = vector.broadcast %cst_11 : f32 to vector<16x128xf32>
    %64 = arith.select %62, %60, %63 : vector<16x128xi1>, vector<16x128xf32>
    %65 = vector.extract_strided_slice %4 {offsets = [0, 8], sizes = [16, 120], strides = [1, 1]} : vector<16x128xf32> to vector<16x120xf32>
    %66 = vector.extract_strided_slice %4 {offsets = [0, 0], sizes = [16, 8], strides = [1, 1]} : vector<16x128xf32> to vector<16x8xf32>
    %67 = tpu.concatenate %65, %66 in 1 : vector<16x120xf32>, vector<16x8xf32> -> vector<16x128xf32>
    %cst_12 = arith.constant 0.000000e+00 : f32
    %68 = vector.shape_cast %15 : vector<1x128xi1> to vector<1x128xi1>
    %69 = vector.broadcast %68 : vector<1x128xi1> to vector<16x128xi1>
    %70 = vector.broadcast %cst_12 : f32 to vector<16x128xf32>
    %71 = arith.select %69, %67, %70 : vector<16x128xi1>, vector<16x128xf32>
    %72 = arith.andi %15, %19 : vector<1x128xi1>
    %73 = vector.extract_strided_slice %4 {offsets = [0, 9], sizes = [16, 119], strides = [1, 1]} : vector<16x128xf32> to vector<16x119xf32>
    %74 = vector.extract_strided_slice %4 {offsets = [0, 0], sizes = [16, 9], strides = [1, 1]} : vector<16x128xf32> to vector<16x9xf32>
    %75 = tpu.concatenate %73, %74 in 1 : vector<16x119xf32>, vector<16x9xf32> -> vector<16x128xf32>
    %cst_13 = arith.constant 0.000000e+00 : f32
    %76 = vector.shape_cast %72 : vector<1x128xi1> to vector<1x128xi1>
    %77 = vector.broadcast %76 : vector<1x128xi1> to vector<16x128xi1>
    %78 = vector.broadcast %cst_13 : f32 to vector<16x128xf32>
    %79 = arith.select %77, %75, %78 : vector<16x128xi1>, vector<16x128xf32>
    %80 = tpu.concatenate %27, %34, %42, %49, %4, %56, %64, %71, %79 in 0 : vector<16x128xf32>, vector<16x128xf32>, vector<16x128xf32>, vector<16x128xf32>, vector<16x128xf32>, vector<16x128xf32>, vector<16x128xf32>, vector<16x128xf32>, vector<16x128xf32> -> vector<144x128xf32>
    %c0_14 = arith.constant 0 : index
    %c0_15 = arith.constant 0 : index
    %81 = vector.load %arg1[%c0_14, %c0_15] : memref<8x144xf32, #tpu.memory_space<vmem>>, vector<8x144xf32>
    %cst_16 = arith.constant dense<0.000000e+00> : vector<8x128xf32>
    %82 = tpu.matmul %81, %80, %cst_16 {dimension_numbers = #tpu.dot_dimension_numbers<[1], [0], [0], [1], [0, 0, 1, 1], [], []>} : vector<8x144xf32>, vector<144x128xf32>, vector<8x128xf32> -> vector<8x128xf32>
    %c0_17 = arith.constant 0 : index
    %c0_18 = arith.constant 0 : index
    %83 = vector.load %arg2[%c0_17, %c0_18] : memref<8x1xf32, #tpu.memory_space<vmem>>, vector<8x1xf32>
    %84 = vector.broadcast %83 : vector<8x1xf32> to vector<8x128xf32>
    %85 = arith.addf %82, %84 : vector<8x128xf32>
    %cst_19 = arith.constant 0.000000e+00 : f32
    %86 = vector.broadcast %cst_19 : f32 to vector<8x128xf32>
    %87 = arith.maximumf %85, %86 : vector<8x128xf32>
    %88 = vector.extract_strided_slice %87 {offsets = [0, 0], sizes = [8, 64], strides = [1, 1]} : vector<8x128xf32> to vector<8x64xf32>
    %89 = vector.extract_strided_slice %88 {offsets = [0, 0], sizes = [1, 64], strides = [1, 1]} : vector<8x64xf32> to vector<1x64xf32>
    %90 = vector.extract_strided_slice %88 {offsets = [1, 0], sizes = [1, 64], strides = [1, 1]} : vector<8x64xf32> to vector<1x64xf32>
    %91 = vector.extract_strided_slice %88 {offsets = [2, 0], sizes = [1, 64], strides = [1, 1]} : vector<8x64xf32> to vector<1x64xf32>
    %92 = vector.extract_strided_slice %88 {offsets = [3, 0], sizes = [1, 64], strides = [1, 1]} : vector<8x64xf32> to vector<1x64xf32>
    %93 = vector.extract_strided_slice %88 {offsets = [4, 0], sizes = [1, 64], strides = [1, 1]} : vector<8x64xf32> to vector<1x64xf32>
    %94 = vector.extract_strided_slice %88 {offsets = [5, 0], sizes = [1, 64], strides = [1, 1]} : vector<8x64xf32> to vector<1x64xf32>
    %95 = vector.extract_strided_slice %88 {offsets = [6, 0], sizes = [1, 64], strides = [1, 1]} : vector<8x64xf32> to vector<1x64xf32>
    %96 = vector.extract_strided_slice %88 {offsets = [7, 0], sizes = [1, 64], strides = [1, 1]} : vector<8x64xf32> to vector<1x64xf32>
    %97 = tpu.concatenate %89, %90, %91, %92, %93, %94, %95, %96 in 1 : vector<1x64xf32>, vector<1x64xf32>, vector<1x64xf32>, vector<1x64xf32>, vector<1x64xf32>, vector<1x64xf32>, vector<1x64xf32>, vector<1x64xf32> -> vector<1x512xf32>
    %98 = vector.extract_strided_slice %87 {offsets = [0, 64], sizes = [8, 64], strides = [1, 1]} : vector<8x128xf32> to vector<8x64xf32>
    %99 = vector.extract_strided_slice %98 {offsets = [0, 0], sizes = [1, 64], strides = [1, 1]} : vector<8x64xf32> to vector<1x64xf32>
    %100 = vector.extract_strided_slice %98 {offsets = [1, 0], sizes = [1, 64], strides = [1, 1]} : vector<8x64xf32> to vector<1x64xf32>
    %101 = vector.extract_strided_slice %98 {offsets = [2, 0], sizes = [1, 64], strides = [1, 1]} : vector<8x64xf32> to vector<1x64xf32>
    %102 = vector.extract_strided_slice %98 {offsets = [3, 0], sizes = [1, 64], strides = [1, 1]} : vector<8x64xf32> to vector<1x64xf32>
    %103 = vector.extract_strided_slice %98 {offsets = [4, 0], sizes = [1, 64], strides = [1, 1]} : vector<8x64xf32> to vector<1x64xf32>
    %104 = vector.extract_strided_slice %98 {offsets = [5, 0], sizes = [1, 64], strides = [1, 1]} : vector<8x64xf32> to vector<1x64xf32>
    %105 = vector.extract_strided_slice %98 {offsets = [6, 0], sizes = [1, 64], strides = [1, 1]} : vector<8x64xf32> to vector<1x64xf32>
    %106 = vector.extract_strided_slice %98 {offsets = [7, 0], sizes = [1, 64], strides = [1, 1]} : vector<8x64xf32> to vector<1x64xf32>
    %107 = tpu.concatenate %99, %100, %101, %102, %103, %104, %105, %106 in 1 : vector<1x64xf32>, vector<1x64xf32>, vector<1x64xf32>, vector<1x64xf32>, vector<1x64xf32>, vector<1x64xf32>, vector<1x64xf32>, vector<1x64xf32> -> vector<1x512xf32>
    %108 = tpu.concatenate %97, %107 in 0 : vector<1x512xf32>, vector<1x512xf32> -> vector<2x512xf32>
    %c0_20 = arith.constant 0 : index
    %c0_21 = arith.constant 0 : index
    %109 = vector.load %arg3[%c0_20, %c0_21] : memref<512x3xf32, #tpu.memory_space<vmem>>, vector<512x3xf32>
    %cst_22 = arith.constant dense<0.000000e+00> : vector<2x3xf32>
    %110 = tpu.matmul %108, %109, %cst_22 {dimension_numbers = #tpu.dot_dimension_numbers<[1], [0], [0], [1], [0, 0, 1, 1], [], []>} : vector<2x512xf32>, vector<512x3xf32>, vector<2x3xf32> -> vector<2x3xf32>
    %c0_23 = arith.constant 0 : index
    %c0_24 = arith.constant 0 : index
    %111 = vector.load %arg4[%c0_23, %c0_24] : memref<1x3xf32, #tpu.memory_space<vmem>>, vector<1x3xf32>
    %112 = vector.broadcast %111 : vector<1x3xf32> to vector<2x3xf32>
    %113 = arith.addf %110, %112 : vector<2x3xf32>
    %cst_25 = arith.constant dense<0xFF800000> : vector<2xf32>
    %114 = vector.multi_reduction <maximumf>, %113, %cst_25 [1] : vector<2x3xf32> to vector<2xf32>
    %115 = vector.shape_cast %114 : vector<2xf32> to vector<2x1xf32>
    %116 = vector.broadcast %115 : vector<2x1xf32> to vector<2x3xf32>
    %117 = arith.subf %113, %116 : vector<2x3xf32>
    %118 = math.exp %117 : vector<2x3xf32>
    %cst_26 = arith.constant dense<0.000000e+00> : vector<2xf32>
    %119 = vector.multi_reduction <add>, %118, %cst_26 [1] : vector<2x3xf32> to vector<2xf32>
    %120 = vector.shape_cast %119 : vector<2xf32> to vector<2x1xf32>
    %121 = vector.broadcast %120 : vector<2x1xf32> to vector<2x3xf32>
    %122 = arith.divf %118, %121 : vector<2x3xf32>
    %c0_27 = arith.constant 0 : index
    %c0_28 = arith.constant 0 : index
    %123 = vector.load %arg5[%c0_27, %c0_28] : memref<2x3xf32, #tpu.memory_space<vmem>>, vector<2x3xf32>
    tpu.vector_store %arg5[%c0_27, %c0_28], %122 {strides = array<i32>} : memref<2x3xf32, #tpu.memory_space<vmem>>, vector<2x3xf32>,
    return
  }
}

</mosaic_0001>

<bundles_post_ra>
// kernel: classifier_forward.1
= control target key start
LH: loop header
LB: loop body
LE: loop exit
PB: predicated region body
PF: predicated region fallthrough
CT: control target
= control target key end

     0   :  { %s666_s20 = smov 64   ;;  %s1027_s0 = inlined_call_operand.vmem [shape: f32[2,16,64], index: 0, kind: input, shape index: {}]   ;;  %s1028_s1 = inlined_call_operand.vmem [shape: f32[8,144], index: 1, kind: input, shape index: {}]   ;;  %s1029_s2 = inlined_call_operand.vmem [shape: f32[8,1], index: 2, kind: input, shape index: {}]   ;;  %s1030_s3 = inlined_call_operand.vmem [shape: f32[512,3], index: 3, kind: input, shape index: {}]   ;;  %s1031_s4 = inlined_call_operand.vmem [shape: f32[1,3], index: 4, kind: input, shape index: {}]   ;;  %s1032_s5 = inlined_call_operand.hbm [shape: f32[2,3], index: 5, kind: output, shape index: {}]  }
   0x1   :  { %v518_v0 = vld [vmem:[%s1027_s0 + $0x18] sm:$0xff] }
   0x2   :  { %30 = vrot.lane.b32.xlu0 %v518_v0, %s666_s20 }
   0x3   :  { %10 = vsyncpa [#allocation3], 0  ;;  %v517_v1 = vld [vmem:[%s1027_s0 + $0x10] sm:$0xff]  ;;  %v667_v2 = vmov 0.0   ;;  %vm34_vm0 = vcmask 523264   ;;  %v22_v3 = vld [vmem:[%s1027_s0 + $0x8] sm:$0xff]  ;;  %v37_v12 = vlaneseq }
   0x4   :  { %144 = vmatprep.subr.mxu0 %v667_v2  ;;  %s668_s25 = smov 121   ;;  %s669_s26 = smov 120   ;;  %v21_v6 = vld [vmem:[%s1027_s0] sm:$0xff]  ;;  %v133_v9 = vld [vmem:[%s1028_s1 + $0x8] sm:$0xff]  ;;  %vm140_vm1 = vcmask 130048   ;;  %v676_v10 = vmov 0  }
   0x5   :  { %s670_s29 = smov 127   ;;  %s671_s30 = smov 1   ;;  %535 = vmatprep.mubr.msk.f32.mxu0 %vm140_vm1, %v133_v9  ;;  %619 = vset.pattern.permute.xlu0 %v676_v10  ;;  %v134_v11 = vld [vmem:[%s1029_s2] sm:$0xff]  ;;  %v38_v13 = vand.u32 127, %v37_v12  ;;  %v310_v36 = vld [vmem:[%s1030_s3 + $0xf8] sm:$0xff]  ;;  %v309_v38 = vld [vmem:[%s1030_s3 + $0xf0] sm:$0xff] }
   0x6   :  { %28 = vrot.lane.b32.xlu0 %v517_v1, %s666_s20  ;;  %s672_s6 = smov 7   ;;  %s673_s7 = smov 8   ;;  %v132_v34 = vld [vmem:[%s1028_s1] sm:$0xff]  ;;  %v294_v37 = vld [vmem:[%s1030_s3 + $0x78] sm:$0xff]  ;;  %537 = vmatprep.subr.mxu1 %v310_v36  ;;  %v293_v39 = vld [vmem:[%s1030_s3 + $0x70] sm:$0xff]  ;;  %vm274_vm10 = vcmask 1040384  }
   0x7   :  { %s674_s8 = smov 9   ;;  %s675_s10 = smov 119   ;;  %v39_v14 = vshra.s32 %v38_v13, 3  ;;  %v41_v16 = vand.u32 7, %v38_v13  ;;  %538 = vmatpush3.msra.mxu1 %v294_v37  ;;  %v308_v40 = vld [vmem:[%s1030_s3 + $0xe8] sm:$0xff]  ;;  %v307_v42 = vld [vmem:[%s1030_s3 + $0xe0] sm:$0xff] }
   0x8   :  { %539 = vmatprep.subr.mxu1 %v309_v38  ;;  %v292_v41 = vld [vmem:[%s1030_s3 + $0x68] sm:$0xff]  ;;  %v291_v43 = vld [vmem:[%s1030_s3 + $0x60] sm:$0xff]  ;;  %v306_v44 = vld [vmem:[%s1030_s3 + $0xd8] sm:$0xff]  ;;  %vm490_vm11 = vcmask 17408  }
   0x9   :  { %v40_v15 = vand.u32 7, %v39_v14  ;;  %vm732_vm3 = vcmp.ge.s32.totalorder %v41_v16, 1  ;;  %vm743_vm5 = vcmp.le.s32.totalorder %v41_v16, 6  ;;  %540 = vmatpush3.msra.mxu1 %v293_v39  ;;  %v290_v45 = vld [vmem:[%s1030_s3 + $0x58] sm:$0xff]  ;;  %v305_v46 = vld [vmem:[%s1030_s3 + $0xd0] sm:$0xff]  ;;  %v304_v48 = vld [vmem:[%s1030_s3 + $0xc8] sm:$0xff] }
   0xa   :  { %541 = vmatprep.subr.mxu1 %v308_v40  ;;  %v289_v47 = vld [vmem:[%s1030_s3 + $0x50] sm:$0xff]  ;;  %v288_v49 = vld [vmem:[%s1030_s3 + $0x48] sm:$0xff]  ;;  %v303_v50 = vld [vmem:[%s1030_s3 + $0xc0] sm:$0xff] }
   0xb   :  { %vm43_vm2 = vcmp.le.s32.totalorder %v40_v15, 6  ;;  %vm42_vm6 = vcmp.ge.s32.totalorder %v40_v15, 1  ;;  %542 = vmatpush3.msra.mxu1 %v292_v41  ;;  %v287_v51 = vld [vmem:[%s1030_s3 + $0x40] sm:$0xff]  ;;  %v302_v52 = vld [vmem:[%s1030_s3 + $0xb8] sm:$0xff]  ;;  %v301_v54 = vld [vmem:[%s1030_s3 + $0xb0] sm:$0xff] }
   0xc   :  { %vm100_vm4 = vmand %vm43_vm2, %vm732_vm3  ;;  %543 = vmatprep.subr.mxu1 %v307_v42  ;;  %v286_v53 = vld [vmem:[%s1030_s3 + $0x38] sm:$0xff]  ;;  %v285_v55 = vld [vmem:[%s1030_s3 + $0x30] sm:$0xff] }
   0xd   :  { %vm69_vm7 = vmand %vm42_vm6, %vm743_vm5  ;;  %544 = vmatpush3.msra.mxu1 %v291_v43  ;;  %v300_v56 = vld [vmem:[%s1030_s3 + $0xa8] sm:$0xff]  ;;  %v299_v58 = vld [vmem:[%s1030_s3 + $0xa0] sm:$0xff] }
   0xe   :  { %vm46_vm8 = vmand %vm42_vm6, %vm732_vm3  ;;  %545 = vmatprep.subr.mxu1 %v306_v44  ;;  %v284_v57 = vld [vmem:[%s1030_s3 + $0x28] sm:$0xff]  ;;  %v283_v59 = vld [vmem:[%s1030_s3 + $0x20] sm:$0xff] }
   0xf   :  { %vm121_vm9 = vmand %vm43_vm2, %vm743_vm5  ;;  %546 = vmatpush3.msra.mxu1 %v290_v45  ;;  %v298_v60 = vld [vmem:[%s1030_s3 + $0x98] sm:$0xff]  ;;  %v297_v63 = vld [vmem:[%s1030_s3 + $0x90] sm:$0xff] }
  0x10   :  { %547 = vmatprep.subr.mxu1 %v305_v46  ;;  %v282_v61 = vld [vmem:[%s1030_s3 + $0x18] sm:$0xff]  ;;  %v281_v0 = vld [vmem:[%s1030_s3 + $0x10] sm:$0xff]  ;;  %v340_v44 = vld [vmem:[%s1030_s3 + $0x1e8] sm:$0xff] }
  0x11   :  { %548 = vmatpush3.msra.mxu1 %v289_v47  ;;  %v342_v9 = vld [vmem:[%s1030_s3 + $0x1f8] sm:$0xff]  ;;  %v341_v41 = vld [vmem:[%s1030_s3 + $0x1f0] sm:$0xff]  ;;  %v324_v47 = vld [vmem:[%s1030_s3 + $0x168] sm:$0xff] }
  0x12   :  { %549 = vmatprep.subr.mxu1 %v304_v48  ;;  %v326_v39 = vld [vmem:[%s1030_s3 + $0x178] sm:$0xff]  ;;  %v325_v42 = vld [vmem:[%s1030_s3 + $0x170] sm:$0xff]  ;;  %v339_v48 = vld [vmem:[%s1030_s3 + $0x1e0] sm:$0xff] }
  0x13   :  { %550 = vmatpush3.msra.mxu1 %v288_v49  ;;  %v323_v49 = vld [vmem:[%s1030_s3 + $0x160] sm:$0xff] }
  0x14   :  { %551 = vmatprep.subr.mxu1 %v303_v50  ;;  %v338_v50 = vld [vmem:[%s1030_s3 + $0x1d8] sm:$0xff] }
  0x15   :  { %552 = vmatpush3.msra.mxu1 %v287_v51  ;;  %v322_v51 = vld [vmem:[%s1030_s3 + $0x158] sm:$0xff] }
  0x16   :  { %553 = vmatprep.subr.mxu1 %v302_v52  ;;  %v337_v52 = vld [vmem:[%s1030_s3 + $0x1d0] sm:$0xff] }
  0x17   :  { %554 = vmatpush3.msra.mxu1 %v286_v53  ;;  %v321_v53 = vld [vmem:[%s1030_s3 + $0x150] sm:$0xff] }
  0x18   :  { %555 = vmatprep.subr.mxu1 %v301_v54  ;;  %v336_v54 = vld [vmem:[%s1030_s3 + $0x1c8] sm:$0xff] }
  0x19   :  { %556 = vmatpush3.msra.mxu1 %v285_v55  ;;  %v320_v55 = vld [vmem:[%s1030_s3 + $0x148] sm:$0xff] }
  0x1a   :  { %557 = vmatprep.subr.mxu1 %v300_v56  ;;  %v335_v56 = vld [vmem:[%s1030_s3 + $0x1c0] sm:$0xff] }
  0x1b   :  { %558 = vmatpush3.msra.mxu1 %v284_v57  ;;  %v319_v57 = vld [vmem:[%s1030_s3 + $0x140] sm:$0xff] }
  0x1c   :  { %559 = vmatprep.subr.mxu1 %v299_v58  ;;  %v334_v58 = vld [vmem:[%s1030_s3 + $0x1b8] sm:$0xff] }
  0x1d   :  { %560 = vmatpush3.msra.mxu1 %v283_v59  ;;  %v318_v59 = vld [vmem:[%s1030_s3 + $0x138] sm:$0xff] }
  0x1e   :  { %561 = vmatprep.subr.mxu1 %v298_v60  ;;  %v333_v60 = vld [vmem:[%s1030_s3 + $0x1b0] sm:$0xff] }
  0x1f   :  { %562 = vmatpush3.msra.mxu1 %v282_v61  ;;  %v317_v61 = vld [vmem:[%s1030_s3 + $0x130] sm:$0xff] }
  0x20   :  { %563 = vmatprep.subr.mxu1 %v297_v63  ;;  %v316_v63 = vld [vmem:[%s1030_s3 + $0x128] sm:$0xff] }
  0x21   :  { %564 = vmatpush3.msra.mxu1 %v281_v0  ;;  %v331_v0 = vld [vmem:[%s1030_s3 + $0x1a0] sm:$0xff] }
  0x74   :  { %v31_v4 = vpop.permute.xlu0 %30 }
  0x75   :  { %v36_v5 = vsel %vm34_vm0, %v22_v3, %v31_v4  ;;  %v280_v3 = vld [vmem:[%s1030_s3 + $0x8] sm:$0xff]  ;;  %v295_v4 = vld [vmem:[%s1030_s3 + $0x80] sm:$0xff] }
  0x76   :  { %103 = vrot.lane.b32.xlu0 %v36_v5, %s668_s25  ;;  %113 = vrot.lane.b32.xlu1 %v36_v5, %s669_s26 }
  0x78   :  { %v29_v7 = vpop.permute.xlu0 %28 }
  0x79   :  { %v35_v8 = vsel %vm34_vm0, %v21_v6, %v29_v7  ;;  %v279_v6 = vld [vmem:[%s1030_s3] sm:$0xff] }
  0x7a   :  { %92 = vrot.lane.b32.xlu0 %v36_v5, %s670_s29  ;;  %111 = vrot.lane.b32.xlu1 %v35_v8, %s669_s26 }
  0x7e   :  { %82 = vrot.lane.b32.xlu0 %v36_v5, %s671_s30  ;;  %101 = vrot.lane.b32.xlu1 %v35_v8, %s668_s25 }
  0x82   :  { %72 = vrot.lane.b32.xlu0 %v36_v5, %s672_s6  ;;  %90 = vrot.lane.b32.xlu1 %v35_v8, %s670_s29 }
  0x86   :  { %61 = vrot.lane.b32.xlu0 %v36_v5, %s673_s7  ;;  %80 = vrot.lane.b32.xlu1 %v35_v8, %s671_s30 }
  0x8a   :  { %51 = vrot.lane.b32.xlu0 %v36_v5, %s674_s8  ;;  %70 = vrot.lane.b32.xlu1 %v35_v8, %s672_s6 }
  0x8e   :  { %124 = vrot.lane.b32.xlu0 %v36_v5, %s675_s10  ;;  %59 = vrot.lane.b32.xlu1 %v35_v8, %s673_s7 }
  0x92   :  { %49 = vrot.lane.b32.xlu1 %v35_v8, %s674_s8  ;;  %137 = vperm.xlu0 %619, %v134_v11  }
  0x96   :  { %122 = vrot.lane.b32.xlu1 %v35_v8, %s675_s10 }
  0xe8   :  { %v104_v17 = vpop.permute.xlu0 %103  ;;  %v114_v18 = vpop.permute.xlu1 %113 }
  0xe9   :  { %519 = vmatpush1.msk.msra.mxu0 %vm43_vm2, %v114_v18 }
  0xea   :  { %146 = vmatprep.subr.mxu0 %v667_v2 }
  0xec   :  { %v93_v20 = vpop.permute.xlu0 %92  ;;  %v112_v21 = vpop.permute.xlu1 %111 }
  0xed   :  { %520 = vmatpush1.msk.msra.mxu0 %vm43_vm2, %v112_v21 }
  0xee   :  { %148 = vmatprep.subr.mxu0 %v667_v2 }
  0xef   :  { %521 = vmatpush1.msk.msra.mxu0 %vm100_vm4, %v104_v17 }
  0xf0   :  { %150 = vmatprep.subr.mxu0 %v667_v2  ;;  %v102_v22 = vpop.permute.xlu1 %101  ;;  %v83_v24 = vpop.permute.xlu0 %82 }
  0xf1   :  { %522 = vmatpush1.msk.msra.mxu0 %vm100_vm4, %v102_v22 }
  0xf2   :  { %152 = vmatprep.subr.mxu0 %v667_v2 }
  0xf3   :  { %523 = vmatpush1.msk.msra.mxu0 %vm743_vm5, %v93_v20 }
  0xf4   :  { %154 = vmatprep.subr.mxu0 %v667_v2  ;;  %v91_v25 = vpop.permute.xlu1 %90  ;;  %v73_v26 = vpop.permute.xlu0 %72 }
  0xf5   :  { %524 = vmatpush1.msk.msra.mxu0 %vm743_vm5, %v91_v25 }
  0xf6   :  { %156 = vmatprep.subr.mxu0 %v667_v2 }
  0xf7   :  { %157 = vmatpush1.msra.mxu0 %v36_v5 }
  0xf8   :  { %158 = vmatprep.subr.mxu0 %v667_v2  ;;  %v81_v27 = vpop.permute.xlu1 %80  ;;  %v62_v29 = vpop.permute.xlu0 %61 }
  0xf9   :  { %159 = vmatpush1.msra.mxu0 %v35_v8 }
  0xfa   :  { %160 = vmatprep.subr.mxu0 %v667_v2 }
  0xfb   :  { %525 = vmatpush1.msk.msra.mxu0 %vm732_vm3, %v83_v24 }
  0xfc   :  { %162 = vmatprep.subr.mxu0 %v667_v2  ;;  %v71_v28 = vpop.permute.xlu1 %70  ;;  %v52_v31 = vpop.permute.xlu0 %51 }
  0xfd   :  { %526 = vmatpush1.msk.msra.mxu0 %vm732_vm3, %v81_v27 }
  0xfe   :  { %164 = vmatprep.subr.mxu0 %v667_v2 }
  0xff   :  { %527 = vmatpush1.msk.msra.mxu0 %vm69_vm7, %v73_v26 }
 0x100   :  { %166 = vmatprep.subr.mxu0 %v667_v2  ;;  %v60_v30 = vpop.permute.xlu1 %59  ;;  %v125_v33 = vpop.permute.xlu0 %124 }
 0x101   :  { %528 = vmatpush1.msk.msra.mxu0 %vm69_vm7, %v71_v28 }
 0x102   :  { %168 = vmatprep.subr.mxu0 %v667_v2 }
 0x103   :  { %529 = vmatpush1.msk.msra.mxu0 %vm42_vm6, %v62_v29 }
 0x104   :  { %170 = vmatprep.subr.mxu0 %v667_v2  ;;  %v50_v32 = vpop.permute.xlu1 %49 }
 0x105   :  { %530 = vmatpush1.msk.msra.mxu0 %vm42_vm6, %v60_v30 }
 0x106   :  { %172 = vmatprep.subr.mxu0 %v667_v2 }
 0x107   :  { %531 = vmatpush1.msk.msra.mxu0 %vm46_vm8, %v52_v31 }
 0x108   :  { %174 = vmatprep.subr.mxu0 %v667_v2  ;;  %v123_v35 = vpop.permute.xlu1 %122 }
 0x109   :  { %532 = vmatpush1.msk.msra.mxu0 %vm46_vm8, %v50_v32 }
 0x10a   :  { %204 = vmatprep.subr.mxu0 %v667_v2 }
 0x10b   :  { %533 = vmatpush2.msk.msra.mxu0 %vm121_vm9, %v125_v33 }
 0x10c   :  { %206 = vmatprep.subr.mxu0 %v667_v2  ;;  %v296_v2 = vld [vmem:[%s1030_s3 + $0x88] sm:$0xff] }
 0x10d   :  { %534 = vmatpush2.msk.msra.mxu0 %vm121_vm9, %v123_v35  ;;  %v138_v62 = vpop.permute.xlu0 %137  ;;  %565 = vmatprep.subr.mxu1 %v296_v2  ;;  %v330_v2 = vld [vmem:[%s1030_s3 + $0x198] sm:$0xff] }
 0x10e   :  { %209 = vmatmul.mubr.f32.vlgmr.msra.gmra.mxu0 %v132_v34  ;;  %566 = vmatpush3.msra.mxu1 %v280_v3 }
 0x10f   :  { %567 = vmatprep.subr.mxu1 %v295_v4  ;;  %v314_v4 = vld [vmem:[%s1030_s3 + $0x118] sm:$0xff] }
 0x110   :  { %568 = vmatpush3.msra.mxu1 %v279_v6 }
 0x111   :  { %572 = vmatprep.subr.mxu1 %v342_v9  ;;  %v328_v9 = vld [vmem:[%s1030_s3 + $0x188] sm:$0xff] }
 0x1ce   :  { %v210_v1 = vpop.f32.mrf.mxu0 }
 0x1cf   :  { %v211_v5 = vadd.f32 %v210_v1, %v138_v62  ;;  %v332_v62 = vld [vmem:[%s1030_s3 + $0x1a8] sm:$0xff]  ;;  %v315_v1 = vld [vmem:[%s1030_s3 + $0x120] sm:$0xff] }
 0x1d0   :  { %v212_v7 = vpop.f32.mrf.mxu0 }
 0x1d1   :  { %v879_v8 = vmax.f32 %v211_v5, 0.0  ;;  %v329_v5 = vld [vmem:[%s1030_s3 + $0x190] sm:$0xff] }
 0x1d2   :  { %v313_v7 = vld [vmem:[%s1030_s3 + $0x110] sm:$0xff] }
 0x1d3   :  { %v226_v10 = vrot.slane %v879_v8, 4  ;;  %v232_v11 = vrot.slane %v879_v8, 6  ;;  %v220_v12 = vrot.slane %v879_v8, 2  ;;  %v216_v15 = vrot.slane %v879_v8, 1 }
 0x1d4   :  { %v222_v16 = vrot.slane %v879_v8, 3  ;;  %v228_v18 = vrot.slane %v879_v8, 5  ;;  %v234_v19 = vrot.slane %v879_v8, 7 }
 0x1d5   :  { %v630_v13 = vpack.i.bf16 %v226_v10, %v232_v11  ;;  %v620_v14 = vpack.i.bf16 %v879_v8, %v220_v12 }
 0x1d6   :  { %v625_v17 = vpack.i.bf16 %v216_v15, %v222_v16  ;;  %v635_v20 = vpack.i.bf16 %v228_v18, %v234_v19 }
 0x1d7   :  { %631 = vrot.lane.b32.xlu0 %v630_v13, %s666_s20  ;;  %621 = vrot.lane.b32.xlu1 %v620_v14, %s666_s20  ;;  %v327_v13 = vld [vmem:[%s1030_s3 + $0x180] sm:$0xff] }
 0x1d8   :  { %v311_v14 = vld [vmem:[%s1030_s3 + $0x100] sm:$0xff] }
 0x1db   :  { %626 = vrot.lane.b32.xlu1 %v625_v17, %s666_s20 }
 0x1df   :  { %636 = vrot.lane.b32.xlu1 %v635_v20, %s666_s20 }
 0x249   :  { %v900_v21 = vpop.permute.xlu0 %631  ;;  %v622_v22 = vpop.permute.xlu1 %621 }
 0x24a   :  { %v624_v23 = vunpack.i.h.bf16 %v622_v22  ;;  %v623_v24 = vunpack.i.l.bf16 %v622_v22  ;;  %v633_v25 = vunpack.i.l.bf16 %v900_v21  ;;  %v634_v3 = vunpack.i.h.bf16 %v900_v21  ;;  %v536_v21 = vld [vmem:[%s1031_s4] ss:$0 sm:$0xff] }
 0x24c   :  { %v258_v26 = vsel %vm34_vm0, %v624_v23, %v216_v15  ;;  %v259_v27 = vsel %vm34_vm0, %v623_v24, %v222_v16  ;;  %v261_v33 = vsel %vm34_vm0, %v633_v25, %v234_v19 }
 0x24d   :  { %v627_v28 = vpop.permute.xlu1 %626  ;;  %v267_v31 = vrot.slane %v259_v27, 7  ;;  %v266_v32 = vrot.slane %v258_v26, 7  ;;  %v269_v43 = vrot.slane %v261_v33, 7 }
 0x24e   :  { %v629_v29 = vunpack.i.h.bf16 %v627_v28  ;;  %v628_v30 = vunpack.i.l.bf16 %v627_v28 }
 0x250   :  { %v239_v34 = vsel %vm34_vm0, %v220_v12, %v628_v30  ;;  %v238_v35 = vsel %vm34_vm0, %v879_v8, %v629_v29  ;;  %v312_v12 = vld [vmem:[%s1030_s3 + $0x108] sm:$0xff]  ;;  %s677_s3 = smov [#allocation2]  }
 0x251   :  { %v909_v36 = vpop.permute.xlu1 %636  ;;  %v276_v37 = vsel %vm274_vm10, %v239_v34, %v267_v31  ;;  %v275_v38 = vsel %vm274_vm10, %v238_v35, %v266_v32  ;;  %s509_s4 = sshll.u32 %s677_s3, 4  ;;  %s510_s4 = int_to_ptr.vmem [resolvable:$true] %s509_s4 }
 0x252   :  { %v638_v40 = vunpack.i.l.bf16 %v909_v36  ;;  %414 = vmatprep.mubr.f32.mxu1 %v276_v37  ;;  %v639_v6 = vunpack.i.h.bf16 %v909_v36  ;;  %s644_s8 = scalar_lea.vmem %s510_s4, 32  ;;  %p649_p1 = scmp.lt.s32.totalorder %s510_s4, %s510_s4 }
 0x253   :  { %415 = vmatmul.mubr.f32.vlgmr.msra.gmra.mxu1 %v275_v38  ;;  %p645_p0 = scmp.ne.s32.totalorder %s510_s4, %s644_s8  ;;  %p650_p2 = scmp.lt.s32.totalorder %s644_s8, %s644_s8 }
 0x254   :  { %573 = vmatpush3.msra.mxu1 %v326_v39  ;;  %v241_v45 = vsel %vm34_vm0, %v232_v11, %v638_v40  ;;  %v260_v11 = vsel %vm34_vm0, %v634_v3, %v228_v18  ;;  %v240_v15 = vsel %vm34_vm0, %v226_v10, %v639_v6 }
 0x255   :  { %574 = vmatprep.subr.mxu1 %v341_v41  ;;  %v278_v46 = vsel %vm274_vm10, %v241_v45, %v269_v43  ;;  %v268_v16 = vrot.slane %v260_v11, 7  ;;  %p651_p3 = por %p650_p2, %p649_p1 }
 0x256   :  { %575 = vmatpush3.msra.mxu1 %v325_v42  ;;  %484 = vmatprep.mubr.f32.mxu1 %v278_v46 }
 0x257   :  { %576 = vmatprep.subr.mxu1 %v340_v44  ;;  %v277_v17 = vsel %vm274_vm10, %v240_v15, %v268_v16  ;;  %p652_p4 = pnand %p651_p3, %p645_p0 }
 0x258   :  { %577 = vmatpush3.msra.mxu1 %v324_v47 }
 0x259   :  { %578 = vmatprep.subr.mxu1 %v339_v48 }
 0x25a   :  { %579 = vmatpush3.msra.mxu1 %v323_v49 }
 0x25b   :  { %580 = vmatprep.subr.mxu1 %v338_v50 }
 0x25c   :  { %581 = vmatpush3.msra.mxu1 %v322_v51 }
 0x25d   :  { %582 = vmatprep.subr.mxu1 %v337_v52 }
 0x25e   :  { %583 = vmatpush3.msra.mxu1 %v321_v53 }
 0x25f   :  { %584 = vmatprep.subr.mxu1 %v336_v54 }
 0x260   :  { %585 = vmatpush3.msra.mxu1 %v320_v55 }
 0x261   :  { %586 = vmatprep.subr.mxu1 %v335_v56 }
 0x262   :  { %587 = vmatpush3.msra.mxu1 %v319_v57 }
 0x263   :  { %588 = vmatprep.subr.mxu1 %v334_v58 }
 0x264   :  { %589 = vmatpush3.msra.mxu1 %v318_v59 }
 0x265   :  { %590 = vmatprep.subr.mxu1 %v333_v60 }
 0x266   :  { %591 = vmatpush3.msra.mxu1 %v317_v61 }
 0x267   :  { %592 = vmatprep.subr.mxu1 %v332_v62 }
 0x268   :  { %593 = vmatpush3.msra.mxu1 %v316_v63 }
 0x269   :  { %594 = vmatprep.subr.mxu1 %v331_v0 }
 0x26a   :  { %595 = vmatpush3.msra.mxu1 %v315_v1 }
 0x26b   :  { %596 = vmatprep.subr.mxu1 %v330_v2 }
 0x26c   :  { %597 = vmatpush3.msra.mxu1 %v314_v4 }
 0x26d   :  { %598 = vmatprep.subr.mxu1 %v329_v5 }
 0x26e   :  { %599 = vmatpush3.msra.mxu1 %v313_v7 }
 0x26f   :  { %600 = vmatprep.subr.mxu1 %v328_v9 }
 0x270   :  { %601 = vmatpush3.msra.mxu1 %v312_v12 }
 0x271   :  { %602 = vmatprep.subr.mxu1 %v327_v13 }
 0x272   :  { %603 = vmatpush3.msra.mxu1 %v311_v14 }
 0x273   :  { %485 = vmatmul.mubr.f32.vlgmr.msra.gmra.mxu1 %v277_v17 }
 0x313   :  { %v569_v18 = vpop.f32.mrf.mxu1 }
 0x315   :  { %v570_v19 = vpop.f32.mrf.mxu1 }
 0x316   :  { %v571_v20 = vadd.f32 %v570_v19, %v569_v18 }
 0x318   :  { %v417_v24 = vadd.f32 %v571_v20, %v536_v21 }
 0x333   :  { %v604_v22 = vpop.f32.mrf.mxu1 }
 0x335   :  { %v605_v23 = vpop.f32.mrf.mxu1 }
 0x336   :  { %v606_v8 = vadd.f32 %v605_v23, %v604_v22 }
 0x338   :  { %v487_v10 = vadd.f32 %v606_v8, %v417_v24 }
 0x33a   :  { %v491_v25 = vsel %vm490_vm11, %v487_v10, -inf }
 0x33b   :  { %492 = vmax.xlane.f32.xlu0 %v491_v25 }
 0x3c4   :  { %v493_v26 = vpop.xlane.xlu0 %492 }
 0x3c5   :  { %v494_v27 = vsub.f32 %v487_v10, %v493_v26 }
 0x3c7   :  { %v495_v28 = vmul.f32 1.442695, %v494_v27 }
 0x3c9   :  { %640 = vpow2.f32 %v495_v28 }
 0x3d6   :  { %v641_v29 = vpop.eup %640 }
 0x3d7   :  { %v497_v30 = vsel %vm490_vm11, %v641_v29, 0.0 }
 0x3d8   :  { %498 = vadd.xlane.f32.xlu1 %v497_v30 }
 0x461   :  { %v499_v31 = vpop.xlane.xlu1 %498 }
 0x462   :  { %642 = vrcp.f32 %v499_v31 }
 0x46f   :  { %v643_v32 = vpop.eup %642 }
 0x470   :  { %v501_v33 = vmul.f32 %v643_v32, %v641_v29 }
 0x472   :  { %502 = vst.msk [vmem:[#allocation2] sm:$0x3] %vm490_vm11, %v501_v33 }
 0x473   :  { %655 = shalt.err (!%p652_p4)
}
 0x474   :  { %512 = dma.vmem_to_hbm [thread:$0]  %s510_s4, 32, %s1032_s5, [#allocation3]  }
 0x475   :  { %664 = dma.done.wait [#allocation3], 32  }
 0x476   :  { %665 = vsyncadd [#allocation3], 4294967264 }
 0x477   :  { %516 = vsyncpa [#allocation3], 1 }

</bundles_post_ra>
